<compile_context>
chip_gen: v7x
topology: tpu7x:2x2x1
jax: 0.10.0
libtpu: 0.0.40
codegen_flags: <defaults>
</compile_context>

<pallas_src>
import functools
import math

import jax
import jax.numpy as jnp
from jax import lax
from jax.experimental import pallas as pl
from jax.experimental.pallas import tpu as pltpu


# --------------------------------------------------------------------------------------
# Kernel 1: fused K/V projection, channel-major (no transposes), bf16 MXU + f32 accum
# --------------------------------------------------------------------------------------
def _kv_proj_kernel(x_ref, wkv_ref, bkv_ref, k_ref, v_ref):
    # x_ref block: (1, C, Tk) channel-major slice of one batch element (f32).
    c = k_ref.shape[2]
    x_b = x_ref[0].astype(jnp.bfloat16)                                  # (C, Tk)
    kv = jnp.dot(wkv_ref[...], x_b,
                 preferred_element_type=jnp.float32) + bkv_ref[...]      # (2C, Tk) f32
    k_ref[0, 0] = kv[:c].astype(jnp.bfloat16)                            # (C, Tk)
    v_ref[0, 0] = kv[c:].astype(jnp.bfloat16)                            # (C, Tk)


# --------------------------------------------------------------------------------------
# Kernel 2: flash attention (online softmax, K/V resident) + fused Q proj, out_proj,
#           residual add — output written channel-major.
# --------------------------------------------------------------------------------------
def _attn_kernel(x_ref, k_ref, v_ref, wq_ref, bq_ref, wo_ref, bo_ref, o_ref, *, tk):
    f32 = jnp.float32
    bf16 = jnp.bfloat16

    x_cs = x_ref[0]                                                      # (C, Tq) f32
    # Fused Q projection from the residual tile (one small transpose per q-tile;
    # 1/sqrt(C) already folded into wq/bq in the wrapper).
    q = (jnp.dot(jnp.transpose(x_cs).astype(bf16), wq_ref[...],
                 preferred_element_type=f32) + bq_ref[...]).astype(bf16)  # (Tq, C)

    tq, c = q.shape
    num_kv = k_ref.shape[1]                                              # S // tk

    m = jnp.full((tq, 1), -jnp.inf, f32)
    l = jnp.zeros((tq, 1), f32)
    acc = jnp.zeros((tq, c), f32)

    # K/V are fully resident in VMEM for this batch element; the kv loop is fully
    # unrolled (static trip count), so every kv-tile index is static.
    for i in range(num_kv):
        k_t = k_ref[0, i]                                                # (C, Tk) bf16
        v_t = v_ref[0, i]                                                # (C, Tk) bf16
        s = jnp.dot(q, k_t, preferred_element_type=f32)                  # (Tq, Tk) f32
        m_new = jnp.maximum(m, jnp.max(s, axis=-1, keepdims=True))
        alpha = jnp.exp(m - m_new)
        p = jnp.exp(s - m_new)
        l = alpha * l + jnp.sum(p, axis=-1, keepdims=True)
        # p @ V  with V channel-major  ==  rhs-transposed dot (native on MXU)
        acc = alpha * acc + lax.dot_general(
            p.astype(bf16), v_t, (((1,), (1,)), ((), ())),
            preferred_element_type=f32)                                  # (Tq, C)
        m = m_new

    attn = (acc * pl.reciprocal(l, approx=True)).astype(bf16)            # (Tq, C)
    # out_proj directly channel-major:  y_ct = Wo @ attn^T  (rhs-transposed dot —
    # removes the old per-tile finalize transpose), then bias + residual.
    y_ct = lax.dot_general(wo_ref[...], attn, (((1,), (1,)), ((), ())),
                           preferred_element_type=f32)                   # (C, Tq)
    o_ref[0] = x_cs + y_ct + bo_ref[...]


# --------------------------------------------------------------------------------------
# Wrapper
# --------------------------------------------------------------------------------------
def _fit_tile(s, t):
    """Largest 128-multiple divisor of s that is <= t; otherwise the full extent s."""
    for c in (t, 2048, 1024, 512, 256, 128):
        if c % 128 == 0 and 0 < c <= min(s, t) and s % c == 0:
            return c
    return s


def vae_attention_block(x_nchw, w_in, b_in, w_out, b_out, *, tq=512, tk=512):
    """VAE attention block forward.

    x_nchw : (N, C, H, W) float32
    w_in   : (3C, C) fused qkv nn.Linear weight (torch layout: (out, in))
    b_in   : (3C,)
    w_out  : (C, C)  out_proj weight
    b_out  : (C,)
    """
    N, C, H, W = x_nchw.shape
    S = H * W
    f32 = jnp.float32
    bf16 = jnp.bfloat16

    x_ncs = jnp.asarray(x_nchw, f32).reshape(N, C, S)     # free reshape, channel-major

    w_in = jnp.asarray(w_in, f32)
    b_in = jnp.asarray(b_in, f32)
    scale = 1.0 / math.sqrt(C)

    # Q path: pre-transposed + pre-scaled (consumed seq-major inside kernel 2).
    wq_t = (w_in[:C].T * scale).astype(bf16)              # (C, C)
    bq = (b_in[:C] * scale).reshape(1, C)                 # f32, added post-accumulation
    # K/V path: torch (out, in) layout used as-is for the channel-major projection.
    w_kv = w_in[C:].astype(bf16)                          # (2C, C) = [Wk; Wv]
    b_kv = b_in[C:].reshape(2 * C, 1)                     # f32 column bias
    # out_proj: un-transposed (rhs-transposed dot in the finalize -> channel-major y).
    wo = jnp.asarray(w_out, f32).astype(bf16)             # (C, C)
    bo = jnp.asarray(b_out, f32).reshape(C, 1)

    tk = _fit_tile(S, tk)
    tq = _fit_tile(S, tq)
    nk = S // tk

    # v5e's default scoped VMEM is only 16 MiB; raise explicitly (64 MiB is <= physical
    # VMEM on every generation, including v7x).
    vmem_lim = 64 * 1024 * 1024

    # ---- kernel 1: fused K/V projection ------------------------------------------------
    k, v = pl.pallas_call(
        _kv_proj_kernel,
        out_shape=(
            jax.ShapeDtypeStruct((N, nk, C, tk), bf16),
            jax.ShapeDtypeStruct((N, nk, C, tk), bf16),
        ),
        grid_spec=pltpu.PrefetchScalarGridSpec(
            num_scalar_prefetch=0,
            grid=(N, nk),
            in_specs=[
                pl.BlockSpec((1, C, tk), lambda n, si: (n, 0, si)),      # x (channel-major)
                pl.BlockSpec((2 * C, C), lambda n, si: (0, 0)),          # [Wk; Wv], resident
                pl.BlockSpec((2 * C, 1), lambda n, si: (0, 0)),          # [bk; bv] column
            ],
            out_specs=[
                pl.BlockSpec((1, 1, C, tk), lambda n, si: (n, si, 0, 0)),
                pl.BlockSpec((1, 1, C, tk), lambda n, si: (n, si, 0, 0)),
            ],
        ),
        compiler_params=pltpu.CompilerParams(
            dimension_semantics=("parallel", "parallel"),
            vmem_limit_bytes=vmem_lim),
    )(x_ncs, w_kv, b_kv)

    # ---- kernel 2: flash attention (resident K/V) + Q proj + out_proj + residual -------
    out_ncs = pl.pallas_call(
        functools.partial(_attn_kernel, tk=tk),
        out_shape=jax.ShapeDtypeStruct((N, C, S), f32),
        grid_spec=pltpu.PrefetchScalarGridSpec(
            num_scalar_prefetch=0,
            grid=(N, S // tq),
            in_specs=[
                pl.BlockSpec((1, C, tq), lambda n, qi: (n, 0, qi)),      # x: residual + Q src
                pl.BlockSpec((1, nk, C, tk), lambda n, qi: (n, 0, 0, 0)),  # K resident / batch
                pl.BlockSpec((1, nk, C, tk), lambda n, qi: (n, 0, 0, 0)),  # V resident / batch
                pl.BlockSpec((C, C), lambda n, qi: (0, 0)),              # Wq^T (scaled)
                pl.BlockSpec((1, C), lambda n, qi: (0, 0)),              # bq (scaled)
                pl.BlockSpec((C, C), lambda n, qi: (0, 0)),              # Wo
                pl.BlockSpec((C, 1), lambda n, qi: (0, 0)),              # bo (column)
            ],
            out_specs=pl.BlockSpec((1, C, tq), lambda n, qi: (n, 0, qi)),
        ),
        compiler_params=pltpu.CompilerParams(
            dimension_semantics=("parallel", "parallel"),
            vmem_limit_bytes=vmem_lim),
    )(x_ncs, k, v, wq_t, bq, wo, bo)

    return out_ncs.reshape(N, C, H, W)


# --------------------------------------------------------------------------------------
# Pure-JAX f32 reference mirroring the PyTorch forward (single head)
# --------------------------------------------------------------------------------------
def _reference(x_nchw, w_in, b_in, w_out, b_out):
    N, C, H, W = x_nchw.shape
    S = H * W
    x = jnp.transpose(x_nchw.reshape(N, C, S), (0, 2, 1))                # (N, S, C)
    qkv = jnp.einsum("nsc,dc->nsd", x, w_in) + b_in                      # (N, S, 3C)
    q, k, v = qkv[..., :C], qkv[..., C:2 * C], qkv[..., 2 * C:]
    scores = jnp.einsum("nqc,nkc->nqk", q, k) / math.sqrt(C)
    p = jax.nn.softmax(scores, axis=-1)
    attn = jnp.einsum("nqk,nkc->nqc", p, v)
    y = jnp.einsum("nsc,dc->nsd", attn, w_out) + b_out
    out = x + y
    return jnp.transpose(out, (0, 2, 1)).reshape(N, C, H, W)


if __name__ == "__main__":
    # Small shapes consistent with the module: GroupNorm(32, C) implies C % 32 == 0.
    # C=128 keeps the channel (lane) dim dense; H=W=16 -> S=256, and with tq=tk=128 the
    # flash loop runs 2 kv steps per q-tile over 2 q-tiles, exercising the online softmax.
    N, C, H, W = 2, 128, 16, 16

    key = jax.random.PRNGKey(0)
    kx, k1, k2, k3, k4 = jax.random.split(key, 5)

    x = jax.random.normal(kx, (N, C, H, W), dtype=jnp.float32)

    scale = 1.0 / math.sqrt(C)
    w_in = jax.random.uniform(k1, (3 * C, C), jnp.float32, -scale, scale)
    b_in = jax.random.uniform(k2, (3 * C,), jnp.float32, -scale, scale)
    w_out = jax.random.uniform(k3, (C, C), jnp.float32, -scale, scale)
    b_out = jax.random.uniform(k4, (C,), jnp.float32, -scale, scale)

    # TODO(synk): self.groupnorm is declared in __init__ but never invoked by the
    # reference forward(), so it is intentionally omitted here.

    out = vae_attention_block(x, w_in, b_in, w_out, b_out, tq=128, tk=128)
    out = jax.block_until_ready(out)

    ref = _reference(x, w_in, b_in, w_out, b_out)
    assert out.shape == (N, C, H, W)
    # bf16 MXU operands with f32 accumulation -> loosened tolerance vs the f32 reference.
    max_err = jnp.max(jnp.abs(out - ref))
    assert jnp.allclose(out, ref, atol=3e-2, rtol=3e-2), (
        f"mismatch vs JAX reference (max |err| = {max_err})")

    print("KERNEL_OK")
</pallas_src>

<mosaic_0001>
module attributes {stable_mosaic.version = 11 : i64} {
  func.func @_kv_proj_kernel(%arg0: i32, %arg1: i32, %arg2: memref<1x128x128xf32, #tpu.memory_space<vmem>>, %arg3: memref<256x128xbf16, #tpu.memory_space<vmem>>, %arg4: memref<256x1xf32, #tpu.memory_space<vmem>>, %arg5: memref<1x1x128x128xbf16, #tpu.memory_space<vmem>>, %arg6: memref<1x1x128x128xbf16, #tpu.memory_space<vmem>>) attributes {dimension_semantics = [#tpu.dimension_semantics<parallel>, #tpu.dimension_semantics<parallel>], iteration_bounds = array<i64: 2, 2>, scalar_prefetch = 0 : i64, scratch_operands = 0 : i64, tpu.core_type = #tpu.core_type<tc>, window_params = [{transform_indices = @transform_0, window_bounds = array<i64: 1, 128, 128>}, {pipeline_mode = #tpu.pipeline_mode<synchronous>, transform_indices = @transform_1, window_bounds = array<i64: 256, 128>}, {pipeline_mode = #tpu.pipeline_mode<synchronous>, transform_indices = @transform_2, window_bounds = array<i64: 256, 1>}, {transform_indices = @transform_3, window_bounds = array<i64: 1, 1, 128, 128>}, {transform_indices = @transform_4, window_bounds = array<i64: 1, 1, 128, 128>}]} {
    %c0 = arith.constant 0 : index
    %c0_0 = arith.constant 0 : index
    %c0_1 = arith.constant 0 : index
    %0 = vector.load %arg2[%c0, %c0_0, %c0_1] : memref<1x128x128xf32, #tpu.memory_space<vmem>>, vector<1x128x128xf32>
    %1 = vector.shape_cast %0 : vector<1x128x128xf32> to vector<128x128xf32>
    %2 = arith.truncf %1 : vector<128x128xf32> to vector<128x128xbf16>
    %c0_2 = arith.constant 0 : index
    %c0_3 = arith.constant 0 : index
    %3 = vector.load %arg3[%c0_2, %c0_3] : memref<256x128xbf16, #tpu.memory_space<vmem>>, vector<256x128xbf16>
    %cst = arith.constant dense<0.000000e+00> : vector<256x128xf32>
    %4 = tpu.matmul %3, %2, %cst {dimension_numbers = #tpu.dot_dimension_numbers<[1], [0], [0], [1], [0, 0, 1, 1], [], []>} : vector<256x128xbf16>, vector<128x128xbf16>, vector<256x128xf32> -> vector<256x128xf32>
    %c0_4 = arith.constant 0 : index
    %c0_5 = arith.constant 0 : index
    %5 = vector.load %arg4[%c0_4, %c0_5] : memref<256x1xf32, #tpu.memory_space<vmem>>, vector<256x1xf32>
    %6 = vector.broadcast %5 : vector<256x1xf32> to vector<256x128xf32>
    %7 = arith.addf %4, %6 : vector<256x128xf32>
    %8 = vector.extract_strided_slice %7 {offsets = [0, 0], sizes = [128, 128], strides = [1, 1]} : vector<256x128xf32> to vector<128x128xf32>
    %9 = arith.truncf %8 : vector<128x128xf32> to vector<128x128xbf16>
    %c0_6 = arith.constant 0 : index
    %c0_7 = arith.constant 0 : index
    %c0_8 = arith.constant 0 : index
    %c0_9 = arith.constant 0 : index
    %10 = vector.load %arg5[%c0_6, %c0_7, %c0_8, %c0_9] : memref<1x1x128x128xbf16, #tpu.memory_space<vmem>>, vector<1x1x128x128xbf16>
    %11 = vector.shape_cast %10 : vector<1x1x128x128xbf16> to vector<128x128xbf16>
    %12 = vector.shape_cast %9 : vector<128x128xbf16> to vector<1x1x128x128xbf16>
    tpu.vector_store %arg5[%c0_6, %c0_7, %c0_8, %c0_9], %12 {strides = array<i32>} : memref<1x1x128x128xbf16, #tpu.memory_space<vmem>>, vector<1x1x128x128xbf16>,
    %13 = vector.extract_strided_slice %7 {offsets = [128, 0], sizes = [128, 128], strides = [1, 1]} : vector<256x128xf32> to vector<128x128xf32>
    %14 = arith.truncf %13 : vector<128x128xf32> to vector<128x128xbf16>
    %c0_10 = arith.constant 0 : index
    %c0_11 = arith.constant 0 : index
    %c0_12 = arith.constant 0 : index
    %c0_13 = arith.constant 0 : index
    %15 = vector.load %arg6[%c0_10, %c0_11, %c0_12, %c0_13] : memref<1x1x128x128xbf16, #tpu.memory_space<vmem>>, vector<1x1x128x128xbf16>
    %16 = vector.shape_cast %15 : vector<1x1x128x128xbf16> to vector<128x128xbf16>
    %17 = vector.shape_cast %14 : vector<128x128xbf16> to vector<1x1x128x128xbf16>
    tpu.vector_store %arg6[%c0_10, %c0_11, %c0_12, %c0_13], %17 {strides = array<i32>} : memref<1x1x128x128xbf16, #tpu.memory_space<vmem>>, vector<1x1x128x128xbf16>,
    return
  }
  func.func @transform_0(%arg0: i32, %arg1: i32) -> (i32, i32, i32) {
    %c0_i32 = arith.constant 0 : i32
    %c0_i32_0 = arith.constant 0 : i32
    return %arg0, %c0_i32, %arg1 : i32, i32, i32
  }
  func.func @transform_1(%arg0: i32, %arg1: i32) -> (i32, i32) {
    %c0_i32 = arith.constant 0 : i32
    %c0_i32_0 = arith.constant 0 : i32
    %c0_i32_1 = arith.constant 0 : i32
    return %c0_i32, %c0_i32_0 : i32, i32
  }
  func.func @transform_2(%arg0: i32, %arg1: i32) -> (i32, i32) {
    %c0_i32 = arith.constant 0 : i32
    %c0_i32_0 = arith.constant 0 : i32
    %c0_i32_1 = arith.constant 0 : i32
    return %c0_i32, %c0_i32_0 : i32, i32
  }
  func.func @transform_3(%arg0: i32, %arg1: i32) -> (i32, i32, i32, i32) {
    %c0_i32 = arith.constant 0 : i32
    %c0_i32_0 = arith.constant 0 : i32
    %c0_i32_1 = arith.constant 0 : i32
    return %arg0, %arg1, %c0_i32, %c0_i32_0 : i32, i32, i32, i32
  }
  func.func @transform_4(%arg0: i32, %arg1: i32) -> (i32, i32, i32, i32) {
    %c0_i32 = arith.constant 0 : i32
    %c0_i32_0 = arith.constant 0 : i32
    %c0_i32_1 = arith.constant 0 : i32
    return %arg0, %arg1, %c0_i32, %c0_i32_0 : i32, i32, i32, i32
  }
}

</mosaic_0001>

<bundles_post_ra>
// kernel: tpu_custom_call.1
= control target key start
LH: loop header
LB: loop body
LE: loop exit
PB: predicated region body
PF: predicated region fallthrough
CT: control target
= control target key end

     0   :  { %s2201_s0 = inlined_call_operand.hbm [shape: f32[2,128,256], index: 0, kind: input, shape index: {}]   ;;  %s2202_s1 = inlined_call_operand.hbm [shape: bf16[256,128], index: 1, kind: input, shape index: {}]   ;;  %s2203_s2 = inlined_call_operand.hbm [shape: f32[256,1], index: 2, kind: input, shape index: {}]   ;;  %s2204_s3 = inlined_call_operand.hbm [shape: bf16[2,2,128,128], index: 3, kind: output, shape index: {0}]   ;;  %s2205_s4 = inlined_call_operand.hbm [shape: bf16[2,2,128,128], index: 4, kind: output, shape index: {1}]  }
   0x1   :  { %2214 = sst [smem:[#allocation17_spill]] %s2202_s1 }
   0x2   :  { %10 = vsyncpa [#allocation3], 0 }
   0x3   :  { %12 = vsyncpa [#allocation3 + $0x1], 0 }
   0x4   :  { %13 = vsyncpa [#allocation6], 0 }
   0x5   :  { %14 = vsyncpa [#allocation4], 0 }
   0x6   :  { %16 = vsyncpa [#allocation4 + $0x1], 0 }
   0x7   :  { %17 = vsyncpa [#allocation10], 0 }
   0x8   :  { %19 = vsyncpa [#allocation10 + $0x1], 0  ;;  %s1800_s15 = smov 0   ;;  %s1802_s16 = smov 0  }
   0x9   :  { %s1804_s17 = smov 0   ;;  %s1806_s18 = smov 0  }
   0xa   :  { %s1808_s19 = smov 0   ;;  %s1810_s20 = smov 0  }
   0xb   :  { %s1812_s21 = smov 0   ;;  %s1814_s22 = smov 0  }
   0xc LB: > { %2215 = sst [smem:[#allocation15_spill]] %s1732_s15  ;;  %s1123_s23 = sadd.s32 4294967295, %s1760_s22   ;;  %s1760_s22 = sphi %s1814_s22, %s25_s22   ;;  %s1756_s21 = sphi %s1812_s21, %s2242_s21   ;;  %s1752_s20 = sphi %s1810_s20, %s2241_s20   ;;  %s1748_s19 = sphi %s1808_s19, %s2240_s19   ;;  %s1744_s18 = sphi %s1806_s18, %s2239_s18   ;;  %s1740_s17 = sphi %s1804_s17, %s2238_s17   ;;  %s1736_s16 = sphi %s1802_s16, %s2237_s16   ;;  %s1732_s15 = sphi %s1800_s15, %s2236_s15  }
   0xd   : > { %s1124_s24 = sadd.s32 4294967294, %s1760_s22   ;;  %p53_p0 = scmp.ne.s32.totalorder %s1740_s17, %s1736_s16 }
   0xe   : > { %p54_p1 = scmp.eq.s32.totalorder %s1760_s22, 0  ;;  %p59_p2 = scmp.ne.s32.totalorder %s1736_s16, %s1732_s15 }
   0xf   : > { %p1848_p3 = scmp.eq.s32.totalorder %s1123_s23, 0  ;;  %p127_p4 = scmp.eq.s32.totalorder %s1123_s23, 3 }
  0x10   : > { %p1852_p5 = por %p54_p1, %p53_p0  ;;  %p133_p6 = scmp.eq.s32.totalorder %s1124_s24, 3 }
  0x11   : > { %s2216_s26 = scalar_select %p1848_p3, 1, 0 }
  0x12   : > { %p1858_p7 = por %p1848_p3, %p59_p2  ;;  %p1862_p8 = por %p127_p4, %p53_p0 }
  0x13   : > { %p1866_p9 = por %p133_p6, %p59_p2  ;;  %p1125_p10 = scmp.ge.s32.totalorder %s1760_s22, 1 }
  0x14   : > { %s2218_s28 = scalar_select %p1858_p7, 1, 0 }
  0x15   : > { %s2219_s29 = scalar_select %p1862_p8, 1, 0 }
  0x16   : > { %s2220_s30 = scalar_select %p1866_p9, 1, 0 }
  0x17   : > { %p168_p11 = scmp.lt.s32.totalorder %s1760_s22, 5  ;;  %s1762_s6 = smov [#allocation5]  }
  0x18   : > { %2221 = sst [smem:[#allocation16_spill]] %s2220_s30  ;;  %s180_s7 = sshll.u32 %s1762_s6, 4  ;;  %s1876_s7 = int_to_ptr.vmem [resolvable:$true] %s180_s7 }
  0x19   : > { %p1872_p12 = pnand %p1125_p10, %p168_p11  ;;  %p1444_p0 = scmp.lt.s32.totalorder %s1760_s22, 4 }
  0x1a   : > { %s1763_s9 = smov [#allocation7]   ;;  %s2225_s1 = sld [smem:[#allocation17_spill]] }
  0x1b   : > { %p1424_p13 = pneg %p1872_p12  ;;  %s193_s10 = sshll.u32 %s1763_s9, 4  ;;  %s1893_s10 = int_to_ptr.vmem [resolvable:$true] %s193_s10 }
  0x1c   : > { %p1889_p2 = pnand %p1444_p0, %p1852_p5 }
  0x1d   : > { %p1883_p1 = pnand %p1424_p13, %p1848_p3 }
  0x1f   : > { %p1542_p6 = pneg %p1883_p1 }
  0x20   : > { %s1540_s14 = scalar_lea.hbm %s2225_s1, 2048 }
  0x21   : > { %p1541_p4 = scmp.ne.s32.totalorder %s2225_s1, %s1540_s14  ;;  %p1547_p5 = scmp.lt.u32.totalorder %s1540_s14, %s2225_s1 }
  0x23   : > { %p1543_p10 = pnand %p1542_p6, %p1541_p4 }
  0x25   : > { %p1544_p11 = pneg %p1543_p10 }
  0x27   : > { %p1549_p13 = pnand %p1547_p5, %p1544_p11 }
  0x29   : > { %1552 = shalt.err (!%p1549_p13)
}
  0x2a   : > { %s1553_s9 = scalar_lea.vmem %s1876_s7, 2048  ;;  %p1561_p3 = scmp.lt.s32.totalorder %s1876_s7, %s1876_s7 }
  0x2b   : > { %p1554_p0 = scmp.ne.s32.totalorder %s1876_s7, %s1553_s9  ;;  %p1562_p4 = scmp.lt.s32.totalorder %s1553_s9, %s1553_s9 }
  0x2d   : > { %p1556_p9 = pnand %p1554_p0, %p1542_p6  ;;  %p1563_p10 = por %p1562_p4, %p1561_p3 }
  0x2f   : > { %p1557_p8 = pneg %p1556_p9 }
  0x31   : > { %p1564_p7 = pnand %p1563_p10, %p1557_p8 }
  0x33   : > { %1567 = shalt.err (!%p1564_p7)
}
  0x34   : > { %s1764_s12 = smov 64   ;;  %s1765_s13 = smov 4  }
  0x35   : > { %1427 = dma.hbm_to_vmem [thread:$0]  (!%p1883_p1), %s2225_s1, 2048, %s1876_s7, [#allocation6], %s1764_s12, %s1764_s12, %s1765_s13  }
  0x36   : > { %s1568_s6 = scalar_lea.hbm %s2203_s2, 4096 }
  0x37   : > { %p1569_p3 = scmp.ne.s32.totalorder %s2203_s2, %s1568_s6  ;;  %p1575_p9 = scmp.lt.u32.totalorder %s1568_s6, %s2203_s2 }
  0x39   : > { %p1571_p7 = pnand %p1569_p3, %p1542_p6 }
  0x3b   : > { %p1572_p8 = pneg %p1571_p7 }
  0x3d   : > { %p1577_p11 = pnand %p1575_p9, %p1572_p8 }
  0x3f   : > { %1580 = shalt.err (!%p1577_p11)
}
  0x40   : > { %s1581_s7 = scalar_lea.vmem %s1893_s10, 4096  ;;  %p1589_p4 = scmp.lt.s32.totalorder %s1893_s10, %s1893_s10 }
  0x41   : > { %p1582_p5 = scmp.ne.s32.totalorder %s1893_s10, %s1581_s7  ;;  %p1590_p10 = scmp.lt.s32.totalorder %s1581_s7, %s1581_s7 }
  0x43   : > { %p1584_p13 = pnand %p1582_p5, %p1542_p6  ;;  %p1591_p3 = por %p1590_p10, %p1589_p4 }
  0x45   : > { %p1585_p0 = pneg %p1584_p13 }
  0x47   : > { %p1592_p7 = pnand %p1591_p3, %p1585_p0 }
  0x49   : > { %1595 = shalt.err (!%p1592_p7)
}
  0x4a   : > { %s2212_s15 = smov 128   ;;  %s2213_s25 = smov 8  }
  0x4b   : > { %1430 = dma.hbm_to_vmem [thread:$0]  (!%p1883_p1), %s2203_s2, 4096, %s1893_s10, [#allocation6], %s2212_s15, %s2212_s15, %s2213_s25  }
  0x4c   : > { %s34_s13 = sadd.s32 1, %s1752_s20  ;;  %s37_s14 = sadd.s32 1, %s1756_s21 }
  0x4d   : > { %p35_p6 = scmp.ge.s32.totalorder %s34_s13, 2  ;;  %s207_s23 = sand.u32 1, %s1740_s17  }
  0x4e   : > { %s1129_s24 = sshll.u32 %s207_s23, 7  ;;  %s1130_s8 = sshll.u32 %s1756_s21, 5 }
  0x4f   : > { %s2244_s13 = smov (%p35_p6, %s34_s13), 0  ;;  %s2246_s14 = smov (!%p35_p6, %s37_s14), %s1756_s21 }
  0x50   : > { %s42_s27 = ssub.s32 %s1752_s20, %s2244_s13  ;;  %p39_p8 = scmp.ge.s32.totalorder %s2246_s14, 2 }
  0x51   : > { %s216_s6 = sadd.s32 %s1752_s20, %s1130_s8  ;;  %s211_s9 = scalar_lea.vmem [#allocation2], %s1129_s24 }
  0x52   : > { %s219_s7 = sshll.u32 %s211_s9, 4  ;;  %s2248_s14 = smov (%p39_p8, %s2246_s14), 0  ;;  %s1962_s7 = int_to_ptr.vmem [resolvable:$true] %s219_s7 }
  0x53   : > { %s1131_s10 = sshll.u32 %s216_s6, 7  ;;  %s41_s30 = ssub.s32 %s1756_s21, %s2248_s14 }
  0x54   : > { %s1969_s25 = scalar_lea.hbm %s2201_s0, %s1131_s10  ;;  %s1971_s1 = sor.u32 %s42_s27, %s41_s30 }
  0x55   : > { %s1974_s24 = scalar_lea.sflag [#allocation3], %s207_s23  ;;  %s1596_s8 = scalar_lea.hbm %s1969_s25, 2048 }
  0x56   : > { %p1597_p9 = scmp.ne.s32.totalorder %s1969_s25, %s1596_s8  ;;  %p1598_p11 = pneg %p1889_p2 }
  0x57   : > { %s1601_s9 = scalar_lea.hbm %s2201_s0, 8192  ;;  %p1602_p0 = scmp.lt.u32.totalorder %s1969_s25, %s2201_s0 }
  0x58   : > { %p1599_p5 = pnand %p1598_p11, %p1597_p9  ;;  %p1603_p4 = scmp.lt.u32.totalorder %s1601_s9, %s1596_s8 }
  0x59   : > { %p1605_p3 = scmp.lt.u32.totalorder %s1596_s8, %s1969_s25 }
  0x5a   : > { %p1600_p13 = pneg %p1599_p5  ;;  %p1604_p10 = por %p1603_p4, %p1602_p0 }
  0x5c   : > { %p1606_p7 = por %p1605_p3, %p1604_p10 }
  0x5e   : > { %p1607_p6 = pnand %p1606_p7, %p1600_p13 }
  0x60   : > { %1610 = shalt.err (!%p1607_p6)
}
  0x61   : > { %s1611_s23 = scalar_lea.vmem %s1962_s7, 2048  ;;  %s1768_s27 = smov [#allocation2]  }
  0x62   : > { %p1612_p8 = scmp.ne.s32.totalorder %s1962_s7, %s1611_s23  ;;  %s1616_s30 = sshll.u32 %s1768_s27, 4  ;;  %s1617_s30 = int_to_ptr.vmem [resolvable:$false] %s1616_s30 }
  0x63   : > { %s1618_s15 = scalar_lea.vmem %s1617_s30, 4096  ;;  %p1619_p1 = scmp.lt.s32.totalorder %s1962_s7, %s1617_s30 }
  0x64   : > { %p1614_p9 = pnand %p1612_p8, %p1598_p11  ;;  %p1620_p0 = scmp.lt.s32.totalorder %s1618_s15, %s1611_s23 }
  0x66   : > { %p1615_p5 = pneg %p1614_p9  ;;  %p1621_p4 = por %p1620_p0, %p1619_p1 }
  0x68   : > { %p1622_p10 = pnand %p1621_p4, %p1615_p5 }
  0x6a   : > { %1625 = shalt.err (!%p1622_p10)
}
  0x6b   : > { %s1769_s8 = smov 256   ;;  %s2226_s6 = smov 8  }
  0x6c   : > { %s2227_s9 = smov 128   ;;  %s2228_s10 = sadd.s32 1, %s1740_s17 }
  0x6d   : > { %1434 = dma.hbm_to_vmem [thread:$0]  (!%p1889_p2), %s1969_s25, 2048, %s1962_s7, %s1974_s24, %s1769_s8, %s2227_s9, %s2226_s6  }
  0x6e   : > { %p2229_p11 = scmp.eq.s32.totalorder %s1971_s1, 0  ;;  %231 = sbr.rel (%p1872_p12) target bundleno = 437 (0x1b5), region = 32 }
  0x6f   : > { %s2014_s23 = sand.u32 (!%p1872_p12), 1, %s1736_s16   ;;  %p2230_p1 = scmp.ne.s32.totalorder (!%p1872_p12), %s2218_s28, 0 }
  0x70   : > { %s2009_s12 = scalar_select %p2229_p11, %s1740_s17, %s2228_s10  }
  0x71   : > { %s1133_s11 = sshll.u32 (!%p1872_p12), %s2014_s23, 7  ;;  %s234_s27 = scalar_lea.sflag (!%p1872_p12), [#allocation3], %s2014_s23 }
  0x72   : > { %s2018_s30 = scalar_lea.vmem (!%p1872_p12), [#allocation2], %s1133_s11 }
  0x75   : > { %1715 = dma.done.wait (%p2230_p1), %s234_s27, 2048  }
  0x76   : > { %1717 = vsyncadd (%p2230_p1), %s234_s27, 4294965248  ;;  %p2231_p2 = scmp.ne.s32.totalorder %s2216_s26, 0 }
  0x78   : > { %1719 = dma.done.wait (%p2231_p2), [#allocation6], 6144  }
  0x79   : > { %1721 = vsyncadd (%p2231_p2), [#allocation6], 4294961152  ;;  %v1770_v0 = vmov 0   ;;  %v276_v1 = vld [vmem:[%s2018_s30] sm:$0xff]  ;;  %v277_v2 = vld [vmem:[%s2018_s30 + $0x8] sm:$0xff]  ;;  %s1136_s1 = sshll.u32 %s2014_s23, 6 }
  0x7a   : > { %1523 = vset.pattern.permute.xlu1 %v1770_v0  ;;  %1522 = vset.pattern.permute.xlu0 %v1770_v0  ;;  %v278_v3 = vld [vmem:[%s2018_s30 + $0x10] sm:$0xff]  ;;  %v292_v4 = vpack.c.bf16 %v277_v2, %v276_v1  ;;  %v279_v5 = vld [vmem:[%s2018_s30 + $0x18] sm:$0xff]  ;;  %v280_v7 = vld [vmem:[%s2018_s30 + $0x20] sm:$0xff]  ;;  %s2067_s26 = scalar_lea.vmem [#allocation8], %s1136_s1  ;;  %s2070_s28 = scalar_lea.vmem [#allocation9], %s1136_s1 }
  0x7b   : > { %v293_v6 = vpack.c.bf16 %v279_v5, %v278_v3  ;;  %v281_v8 = vld [vmem:[%s2018_s30 + $0x28] sm:$0xff]  ;;  %v334_v9 = vld [vmem:[#allocation7 + $0x10] sm:$0xff]  ;;  %v332_v10 = vld [vmem:[#allocation7] sm:$0xff]  ;;  %s1188_s5 = sshll.u32 %s1744_s18, 4  ;;  %s1189_s25 = sshll.u32 %s1748_s19, 5 }
  0x7c   : > { %1346 = vmatprep.subr.bf16.mxu0 %v292_v4  ;;  %1394 = vmatprep.subr.bf16.mxu1 %v292_v4  ;;  %v294_v11 = vpack.c.bf16 %v281_v8, %v280_v7  ;;  %v282_v12 = vld [vmem:[%s2018_s30 + $0x30] sm:$0xff]  ;;  %v283_v13 = vld [vmem:[%s2018_s30 + $0x38] sm:$0xff]  ;;  %v333_v15 = vld [vmem:[#allocation7 + $0x8] sm:$0xff]  ;;  %s2090_s7 = sadd.s32 %s1189_s25, %s1188_s5  ;;  %s962_s24 = sshll.u32 %s2067_s26, 4  ;;  %s2099_s24 = int_to_ptr.vmem [resolvable:$true] %s962_s24 }
  0x7d   : > { %1347 = vmatpush3.bf16.msra.mxu0 %v292_v4  ;;  %1402 = vmatpush3.bf16.msra.mxu1 %v292_v4  ;;  %v335_v14 = vld [vmem:[#allocation7 + $0x18] sm:$0xff]  ;;  %v284_v16 = vld [vmem:[%s2018_s30 + $0x40] sm:$0xff]  ;;  %v295_v18 = vpack.c.bf16 %v283_v13, %v282_v12  ;;  %v285_v20 = vld [vmem:[%s2018_s30 + $0x48] sm:$0xff]  ;;  %s980_s15 = sshll.u32 %s2070_s28, 4  ;;  %s1190_s18 = sshll.u32 %s2090_s7, 6  ;;  %s2101_s15 = int_to_ptr.vmem [resolvable:$true] %s980_s15 }
  0x7e   : > { %1348 = vmatprep.subr.bf16.mxu0 %v293_v6  ;;  %1395 = vmatprep.subr.bf16.mxu1 %v293_v6  ;;  %v1524_v17 = vld [vmem:[#allocation5] sm:$0xff]   ;;  %v337_v21 = vld [vmem:[#allocation7 + $0x28] sm:$0xff]  ;;  %v286_v23 = vld [vmem:[%s2018_s30 + $0x50] sm:$0xff]  ;;  %v296_v24 = vpack.c.bf16 %v285_v20, %v284_v16  ;;  %s2108_s6 = scalar_lea.hbm %s2204_s3, %s1190_s18  ;;  %s2115_s11 = scalar_lea.hbm %s2205_s4, %s1190_s18 }
  0x7f   : > { %376 = vperm.xlu1 %1523, %v334_v9   ;;  %366 = vperm.xlu0 %1522, %v332_v10   ;;  %v1525_v19 = vld [vmem:[#allocation5 + $0x40] sm:$0xff]   ;;  %v287_v25 = vld [vmem:[%s2018_s30 + $0x58] sm:$0xff]  ;;  %v338_v27 = vld [vmem:[#allocation7 + $0x30] sm:$0xff]  ;;  %s942_s27 = scalar_lea.sflag [#allocation4], %s2014_s23  ;;  %p2232_p13 = scmp.ne.s32.totalorder %s2219_s29, 0 }
  0x80   : > { %v336_v22 = vld [vmem:[#allocation7 + $0x20] sm:$0xff]  ;;  %1362 = vmatprep.mubr.bf16.mxu0 %v1524_v17  ;;  %1378 = vmatprep.mubr.bf16.mxu1 %v1525_v19  ;;  %v339_v26 = vld [vmem:[#allocation7 + $0x38] sm:$0xff]  ;;  %v297_v28 = vpack.c.bf16 %v287_v25, %v286_v23  ;;  %v289_v30 = vld [vmem:[%s2018_s30 + $0x68] sm:$0xff]  ;;  %s1771_s1 = smov [#allocation8]  }
  0x81   : > { %1349 = vmatpush3.bf16.msra.mxu0 %v293_v6  ;;  %1403 = vmatpush3.bf16.msra.mxu1 %v293_v6  ;;  %v288_v29 = vld [vmem:[%s2018_s30 + $0x60] sm:$0xff]  ;;  %v341_v31 = vld [vmem:[#allocation7 + $0x48] sm:$0xff]  ;;  %v290_v34 = vld [vmem:[%s2018_s30 + $0x70] sm:$0xff]  ;;  %s1630_s5 = sshll.u32 %s1771_s1, 4  ;;  %s1631_s5 = int_to_ptr.vmem [resolvable:$false] %s1630_s5 }
  0x82   : > { %1350 = vmatprep.subr.bf16.mxu0 %v294_v11  ;;  %1396 = vmatprep.subr.bf16.mxu1 %v294_v11  ;;  %v340_v32 = vld [vmem:[#allocation7 + $0x40] sm:$0xff]  ;;  %v298_v33 = vpack.c.bf16 %v289_v30, %v288_v29  ;;  %v291_v35 = vld [vmem:[%s2018_s30 + $0x78] sm:$0xff]  ;;  %v342_v37 = vld [vmem:[#allocation7 + $0x50] sm:$0xff]  ;;  %s1626_s30 = scalar_lea.vmem %s2099_s24, 1024  ;;  %s1632_s25 = scalar_lea.vmem %s1631_s5, 2048 }
  0x83   : > { %381 = vperm.xlu1 %1523, %v335_v14   ;;  %371 = vperm.xlu0 %1522, %v333_v15   ;;  %v343_v36 = vld [vmem:[#allocation7 + $0x58] sm:$0xff]  ;;  %v299_v38 = vpack.c.bf16 %v291_v35, %v290_v34  ;;  %v345_v39 = vld [vmem:[#allocation7 + $0x68] sm:$0xff]  ;;  %v344_v40 = vld [vmem:[#allocation7 + $0x60] sm:$0xff]  ;;  %p1627_p12 = scmp.ne.s32.totalorder %s2099_s24, %s1626_s30  ;;  %p1633_p6 = scmp.lt.s32.totalorder %s2099_s24, %s1631_s5 }
  0x84   : > { %v1526_v41 = vld [vmem:[#allocation5 + $0x8] sm:$0xff]   ;;  %v347_v43 = vld [vmem:[#allocation7 + $0x78] sm:$0xff]  ;;  %v346_v44 = vld [vmem:[#allocation7 + $0x70] sm:$0xff]  ;;  %p1634_p8 = scmp.lt.s32.totalorder %s1632_s25, %s1626_s30 }
  0x85   : > { %1351 = vmatpush3.bf16.msra.mxu0 %v294_v11  ;;  %1404 = vmatpush3.bf16.msra.mxu1 %v294_v11  ;;  %v1527_v42 = vld [vmem:[#allocation5 + $0x48] sm:$0xff]   ;;  %v1528_v45 = vld [vmem:[#allocation5 + $0x10] sm:$0xff]   ;;  %v348_v48 = vld [vmem:[#allocation7 + $0x80] sm:$0xff]  ;;  %p1628_p3 = pnand %p1627_p12, %p2232_p13 }
  0x86   : > { %1352 = vmatprep.subr.bf16.mxu0 %v295_v18  ;;  %1397 = vmatprep.subr.bf16.mxu1 %v295_v18  ;;  %v1529_v46 = vld [vmem:[#allocation5 + $0x50] sm:$0xff]   ;;  %v349_v47 = vld [vmem:[#allocation7 + $0x88] sm:$0xff]  ;;  %v1530_v49 = vld [vmem:[#allocation5 + $0x18] sm:$0xff]   ;;  %p1635_p9 = por %p1634_p8, %p1633_p6 }
  0x87   : > { %391 = vperm.xlu1 %1523, %v337_v21   ;;  %386 = vperm.xlu0 %1522, %v336_v22   ;;  %v1531_v50 = vld [vmem:[#allocation5 + $0x58] sm:$0xff]   ;;  %v350_v52 = vld [vmem:[#allocation7 + $0x90] sm:$0xff]  ;;  %v1532_v53 = vld [vmem:[#allocation5 + $0x20] sm:$0xff]   ;;  %p1629_p7 = pneg %p1628_p3 }
  0x88   : > { %v351_v51 = vld [vmem:[#allocation7 + $0x98] sm:$0xff]  ;;  %v1533_v54 = vld [vmem:[#allocation5 + $0x60] sm:$0xff]   ;;  %v353_v55 = vld [vmem:[#allocation7 + $0xa8] sm:$0xff] }
  0x89   : > { %1353 = vmatpush3.bf16.msra.mxu0 %v295_v18  ;;  %1405 = vmatpush3.bf16.msra.mxu1 %v295_v18  ;;  %v352_v56 = vld [vmem:[#allocation7 + $0xa0] sm:$0xff]  ;;  %v1534_v57 = vld [vmem:[#allocation5 + $0x28] sm:$0xff]   ;;  %v355_v59 = vld [vmem:[#allocation7 + $0xb8] sm:$0xff]  ;;  %p1636_p5 = pnand %p1635_p9, %p1629_p7 }
  0x8a   : > { %1354 = vmatprep.subr.bf16.mxu0 %v296_v24  ;;  %1398 = vmatprep.subr.bf16.mxu1 %v296_v24  ;;  %v1535_v58 = vld [vmem:[#allocation5 + $0x68] sm:$0xff]   ;;  %v354_v60 = vld [vmem:[#allocation7 + $0xb0] sm:$0xff]  ;;  %v356_v0 = vld [vmem:[#allocation7 + $0xc0] sm:$0xff] }
  0x8b   : > { %401 = vperm.xlu1 %1523, %v339_v26   ;;  %396 = vperm.xlu0 %1522, %v338_v27   ;;  %v1536_v61 = vld [vmem:[#allocation5 + $0x30] sm:$0xff]   ;;  %v357_v63 = vld [vmem:[#allocation7 + $0xc8] sm:$0xff]  ;;  %v1538_v1 = vld [vmem:[#allocation5 + $0x38] sm:$0xff]  }
  0x8c   : > { %v1537_v62 = vld [vmem:[#allocation5 + $0x70] sm:$0xff]   ;;  %v1539_v2 = vld [vmem:[#allocation5 + $0x78] sm:$0xff]   ;;  %v361_v5 = vld [vmem:[#allocation7 + $0xe8] sm:$0xff] }
  0x8d   : > { %1355 = vmatpush3.bf16.msra.mxu0 %v296_v24  ;;  %1406 = vmatpush3.bf16.msra.mxu1 %v296_v24  ;;  %v359_v3 = vld [vmem:[#allocation7 + $0xd8] sm:$0xff]  ;;  %v358_v4 = vld [vmem:[#allocation7 + $0xd0] sm:$0xff]  ;;  %v360_v6 = vld [vmem:[#allocation7 + $0xe0] sm:$0xff] }
  0x8e   : > { %1356 = vmatprep.subr.bf16.mxu0 %v297_v28  ;;  %1399 = vmatprep.subr.bf16.mxu1 %v297_v28  ;;  %v363_v7 = vld [vmem:[#allocation7 + $0xf8] sm:$0xff]  ;;  %v362_v8 = vld [vmem:[#allocation7 + $0xf0] sm:$0xff] }
  0x8f   : > { %411 = vperm.xlu1 %1523, %v341_v31   ;;  %406 = vperm.xlu0 %1522, %v340_v32  }
  0x91   : > { %1357 = vmatpush3.bf16.msra.mxu0 %v297_v28  ;;  %1407 = vmatpush3.bf16.msra.mxu1 %v297_v28 }
  0x92   : > { %1358 = vmatprep.subr.bf16.mxu0 %v298_v33  ;;  %1400 = vmatprep.subr.bf16.mxu1 %v298_v33 }
  0x93   : > { %421 = vperm.xlu1 %1523, %v343_v36   ;;  %416 = vperm.xlu0 %1522, %v342_v37  }
  0x95   : > { %1359 = vmatpush3.bf16.msra.mxu0 %v298_v33  ;;  %1408 = vmatpush3.bf16.msra.mxu1 %v298_v33 }
  0x96   : > { %1360 = vmatprep.subr.bf16.mxu0 %v299_v38  ;;  %1401 = vmatprep.subr.bf16.mxu1 %v299_v38 }
  0x97   : > { %431 = vperm.xlu1 %1523, %v345_v39   ;;  %426 = vperm.xlu0 %1522, %v344_v40  }
  0x99   : > { %1361 = vmatpush3.bf16.msra.mxu0 %v299_v38  ;;  %1409 = vmatpush3.bf16.msra.mxu1 %v299_v38 }
  0x9b   : > { %441 = vperm.xlu1 %1523, %v347_v43   ;;  %436 = vperm.xlu0 %1522, %v346_v44  }
  0x9c   : > { %1363 = vmatmul.mubr.bf16.vlgmr.msra.gmra.mrb[0].mxu0 %v1526_v41  ;;  %1379 = vmatmul.mubr.bf16.vlgmr.msra.gmra.mrb[0].mxu1 %v1527_v42 }
  0x9d   : > { %1366 = vmatprep.mubr.bf16.mxu0 %v1528_v45  ;;  %1382 = vmatprep.mubr.bf16.mxu1 %v1529_v46 }
  0x9f   : > { %451 = vperm.xlu1 %1523, %v349_v47   ;;  %446 = vperm.xlu0 %1522, %v348_v48  }
  0xa3   : > { %461 = vperm.xlu1 %1523, %v351_v51   ;;  %456 = vperm.xlu0 %1522, %v350_v52  }
  0xa4   : > { %1367 = vmatmul.mubr.bf16.gmra.mrb[4].mxu0 %v1530_v49  ;;  %1383 = vmatmul.mubr.bf16.gmra.mrb[4].mxu1 %v1531_v50 }
  0xa5   : > { %1370 = vmatprep.mubr.bf16.mxu0 %v1532_v53  ;;  %1386 = vmatprep.mubr.bf16.mxu1 %v1533_v54 }
  0xa7   : > { %471 = vperm.xlu1 %1523, %v353_v55   ;;  %466 = vperm.xlu0 %1522, %v352_v56  }
  0xab   : > { %481 = vperm.xlu1 %1523, %v355_v59   ;;  %476 = vperm.xlu0 %1522, %v354_v60  }
  0xac   : > { %1371 = vmatmul.mubr.bf16.gmra.mrb[8].mxu0 %v1534_v57  ;;  %1387 = vmatmul.mubr.bf16.gmra.mrb[8].mxu1 %v1535_v58 }
  0xad   : > { %1374 = vmatprep.mubr.bf16.mxu0 %v1536_v61  ;;  %1390 = vmatprep.mubr.bf16.mxu1 %v1537_v62 }
  0xaf   : > { %491 = vperm.xlu1 %1523, %v357_v63   ;;  %486 = vperm.xlu0 %1522, %v356_v0  }
  0xb3   : > { %501 = vperm.xlu1 %1523, %v359_v3   ;;  %496 = vperm.xlu0 %1522, %v358_v4  }
  0xb4   : > { %1375 = vmatmul.mubr.bf16.gmra.mrb[12].mxu0 %v1538_v1  ;;  %1391 = vmatmul.mubr.bf16.gmra.mrb[12].mxu1 %v1539_v2 }
  0xb7   : > { %511 = vperm.xlu1 %1523, %v361_v5   ;;  %506 = vperm.xlu0 %1522, %v360_v6  }
  0xbb   : > { %521 = vperm.xlu1 %1523, %v363_v7   ;;  %516 = vperm.xlu0 %1522, %v362_v8  }
  0xfe   : > { %v377_v9 = vpop.permute.xlu1 %376  ;;  %v367_v10 = vpop.permute.xlu0 %366 }
 0x102   : > { %v382_v11 = vpop.permute.xlu1 %381  ;;  %v372_v12 = vpop.permute.xlu0 %371 }
 0x106   : > { %v2044_v13 = vpop.permute.xlu1 %391  ;;  %v387_v14 = vpop.permute.xlu0 %386 }
 0x10a   : > { %v402_v15 = vpop.permute.xlu1 %401  ;;  %v397_v16 = vpop.permute.xlu0 %396 }
 0x10e   : > { %v2046_v17 = vpop.permute.xlu1 %411  ;;  %v2048_v18 = vpop.permute.xlu0 %406 }
 0x112   : > { %v2050_v19 = vpop.permute.xlu1 %421  ;;  %v2052_v20 = vpop.permute.xlu0 %416 }
 0x116   : > { %v2054_v21 = vpop.permute.xlu1 %431  ;;  %v2056_v22 = vpop.permute.xlu0 %426 }
 0x11a   : > { %v2058_v23 = vpop.permute.xlu1 %441  ;;  %v2060_v24 = vpop.permute.xlu0 %436 }
 0x11e   : > { %v452_v25 = vpop.permute.xlu1 %451  ;;  %v447_v26 = vpop.permute.xlu0 %446 }
 0x122   : > { %v462_v27 = vpop.permute.xlu1 %461  ;;  %v457_v28 = vpop.permute.xlu0 %456 }
 0x126   : > { %v472_v29 = vpop.permute.xlu1 %471  ;;  %v467_v30 = vpop.permute.xlu0 %466 }
 0x12a   : > { %v482_v31 = vpop.permute.xlu1 %481  ;;  %v477_v32 = vpop.permute.xlu0 %476 }
 0x12e   : > { %v2062_v33 = vpop.permute.xlu1 %491  ;;  %v2064_v34 = vpop.permute.xlu0 %486 }
 0x132   : > { %v502_v55 = vpop.permute.xlu1 %501  ;;  %v497_v56 = vpop.permute.xlu0 %496 }
 0x16f   : > { %v1364_v35 = vpop.f32.mrb[0].mxu0  ;;  %v1380_v36 = vpop.f32.mrb[0].mxu1 }
 0x170   : > { %v654_v37 = vpop.f32.mrb[1].mxu0  ;;  %v718_v38 = vpop.f32.mrb[1].mxu1  ;;  %v663_v41 = vadd.f32 %v1364_v35, %v377_v9  ;;  %v727_v42 = vadd.f32 %v1380_v36, %v457_v28 }
 0x171   : > { %v1365_v39 = vpop.f32.mrb[2].mxu0  ;;  %v1381_v40 = vpop.f32.mrb[2].mxu1  ;;  %v655_v47 = vadd.f32 %v654_v37, %v367_v10  ;;  %v719_v48 = vadd.f32 %v718_v38, %v447_v26 }
 0x172   : > { %v666_v43 = vadd.f32 %v1365_v39, %v382_v11  ;;  %v730_v44 = vadd.f32 %v1381_v40, %v462_v27  ;;  %v657_v45 = vpop.f32.mrb[3].mxu0  ;;  %v721_v46 = vpop.f32.mrb[3].mxu1 }
 0x173   : > { %v658_v49 = vadd.f32 %v657_v45, %v372_v12  ;;  %v722_v50 = vadd.f32 %v721_v46, %v452_v25  ;;  %v512_v25 = vpop.permute.xlu1 %511 }
 0x174   : > { %v1236_v51 = vpack.c.bf16 %v666_v43, %v663_v41  ;;  %v1276_v52 = vpack.c.bf16 %v730_v44, %v727_v42 }
 0x175   : > { %v1231_v53 = vpack.c.bf16 %v658_v49, %v655_v47  ;;  %v1271_v54 = vpack.c.bf16 %v722_v50, %v719_v48 }
 0x176   : > { %1308 = vst [vmem:[%s2067_s26 + $0x8] sm:$0xff] %v1236_v51   ;;  %1315 = vst [vmem:[%s2070_s28 + $0x8] sm:$0xff] %v1276_v52  }
 0x177   : > { %1232 = vst [vmem:[%s2067_s26] sm:$0xff] %v1231_v53   ;;  %1272 = vst [vmem:[%s2070_s28] sm:$0xff] %v1271_v54   ;;  %v1368_v57 = vpop.f32.mrb[4].mxu0  ;;  %v1384_v58 = vpop.f32.mrb[4].mxu1 }
 0x178   : > { %v670_v59 = vpop.f32.mrb[5].mxu0  ;;  %v734_v60 = vpop.f32.mrb[5].mxu1  ;;  %v679_v63 = vadd.f32 %v1368_v57, %v397_v16  ;;  %v743_v0 = vadd.f32 %v1384_v58, %v477_v32 }
 0x179   : > { %v1369_v61 = vpop.f32.mrb[6].mxu0  ;;  %v1385_v62 = vpop.f32.mrb[6].mxu1  ;;  %v671_v5 = vadd.f32 %v670_v59, %v387_v14  ;;  %v735_v6 = vadd.f32 %v734_v60, %v467_v30 }
 0x17a   : > { %v682_v1 = vadd.f32 %v1369_v61, %v402_v15  ;;  %v746_v2 = vadd.f32 %v1385_v62, %v482_v31  ;;  %v673_v3 = vpop.f32.mrb[7].mxu0  ;;  %v737_v4 = vpop.f32.mrb[7].mxu1 }
 0x17b   : > { %v674_v7 = vadd.f32 %v673_v3, %v2044_v13  ;;  %v738_v8 = vadd.f32 %v737_v4, %v472_v29  ;;  %v507_v16 = vpop.permute.xlu0 %506  ;;  %v522_v43 = vpop.permute.xlu1 %521 }
 0x17c   : > { %v1246_v9 = vpack.c.bf16 %v682_v1, %v679_v63  ;;  %v1286_v10 = vpack.c.bf16 %v746_v2, %v743_v0 }
 0x17d   : > { %v1241_v11 = vpack.c.bf16 %v674_v7, %v671_v5  ;;  %v1281_v12 = vpack.c.bf16 %v738_v8, %v735_v6 }
 0x17e   : > { %1310 = vst [vmem:[%s2067_s26 + $0x18] sm:$0xff] %v1246_v9   ;;  %1317 = vst [vmem:[%s2070_s28 + $0x18] sm:$0xff] %v1286_v10  }
 0x17f   : > { %1309 = vst [vmem:[%s2067_s26 + $0x10] sm:$0xff] %v1241_v11   ;;  %1316 = vst [vmem:[%s2070_s28 + $0x10] sm:$0xff] %v1281_v12   ;;  %v1372_v15 = vpop.f32.mrb[8].mxu0  ;;  %v1388_v26 = vpop.f32.mrb[8].mxu1 }
 0x180   : > { %v686_v27 = vpop.f32.mrb[9].mxu0  ;;  %v750_v14 = vpop.f32.mrb[9].mxu1  ;;  %v695_v13 = vadd.f32 %v1372_v15, %v2052_v20  ;;  %v759_v29 = vadd.f32 %v1388_v26, %v497_v56 }
 0x181   : > { %v1373_v28 = vpop.f32.mrb[10].mxu0  ;;  %v1389_v30 = vpop.f32.mrb[10].mxu1  ;;  %v687_v37 = vadd.f32 %v686_v27, %v2048_v18  ;;  %v751_v38 = vadd.f32 %v750_v14, %v2064_v34 }
 0x182   : > { %v698_v31 = vadd.f32 %v1373_v28, %v2050_v19  ;;  %v762_v32 = vadd.f32 %v1389_v30, %v502_v55  ;;  %v689_v35 = vpop.f32.mrb[11].mxu0  ;;  %v753_v36 = vpop.f32.mrb[11].mxu1 }
 0x183   : > { %v690_v39 = vadd.f32 %v689_v35, %v2046_v17  ;;  %v754_v40 = vadd.f32 %v753_v36, %v2062_v33  ;;  %v517_v44 = vpop.permute.xlu0 %516 }
 0x184   : > { %v1256_v19 = vpack.c.bf16 %v698_v31, %v695_v13  ;;  %v1296_v20 = vpack.c.bf16 %v762_v32, %v759_v29 }
 0x185   : > { %v1251_v41 = vpack.c.bf16 %v690_v39, %v687_v37  ;;  %v1291_v42 = vpack.c.bf16 %v754_v40, %v751_v38 }
 0x186   : > { %1312 = vst [vmem:[%s2067_s26 + $0x28] sm:$0xff] %v1256_v19   ;;  %1319 = vst [vmem:[%s2070_s28 + $0x28] sm:$0xff] %v1296_v20  }
 0x187   : > { %1311 = vst [vmem:[%s2067_s26 + $0x20] sm:$0xff] %v1251_v41   ;;  %1318 = vst [vmem:[%s2070_s28 + $0x20] sm:$0xff] %v1291_v42   ;;  %v1376_v17 = vpop.f32.mrb[12].mxu0  ;;  %v1392_v18 = vpop.f32.mrb[12].mxu1 }
 0x188   : > { %v702_v33 = vpop.f32.mrb[13].mxu0  ;;  %v766_v34 = vpop.f32.mrb[13].mxu1  ;;  %v711_v47 = vadd.f32 %v1376_v17, %v2060_v24  ;;  %v775_v48 = vadd.f32 %v1392_v18, %v517_v44 }
 0x189   : > { %v1377_v45 = vpop.f32.mrb[14].mxu0  ;;  %v1393_v46 = vpop.f32.mrb[14].mxu1  ;;  %v703_v53 = vadd.f32 %v702_v33, %v2056_v22  ;;  %v767_v24 = vadd.f32 %v766_v34, %v507_v16 }
 0x18a   : > { %v714_v49 = vadd.f32 %v1377_v45, %v2058_v23  ;;  %v778_v50 = vadd.f32 %v1393_v46, %v522_v43  ;;  %v705_v51 = vpop.f32.mrb[15].mxu0  ;;  %v769_v52 = vpop.f32.mrb[15].mxu1 }
 0x18b   : > { %v706_v54 = vadd.f32 %v705_v51, %v2054_v21  ;;  %v770_v23 = vadd.f32 %v769_v52, %v512_v25 }
 0x18c   : > { %v1266_v55 = vpack.c.bf16 %v714_v49, %v711_v47  ;;  %v1306_v56 = vpack.c.bf16 %v778_v50, %v775_v48 }
 0x18d   : > { %v1261_v57 = vpack.c.bf16 %v706_v54, %v703_v53  ;;  %v1301_v58 = vpack.c.bf16 %v770_v23, %v767_v24 }
 0x18e   : > { %1314 = vst [vmem:[%s2067_s26 + $0x38] sm:$0xff] %v1266_v55   ;;  %1321 = vst [vmem:[%s2070_s28 + $0x38] sm:$0xff] %v1306_v56  }
 0x18f   : > { %1313 = vst [vmem:[%s2067_s26 + $0x30] sm:$0xff] %v1261_v57   ;;  %1320 = vst [vmem:[%s2070_s28 + $0x30] sm:$0xff] %v1301_v58  }
 0x190   : > { %1639 = shalt.err (!%p1636_p5)
}
 0x191   : > { %s1640_s26 = scalar_lea.hbm %s2108_s6, 1024  ;;  %s1644_s18 = scalar_lea.hbm %s2204_s3, 4096 }
 0x192   : > { %p1641_p0 = scmp.ne.s32.totalorder %s2108_s6, %s1640_s26  ;;  %p1645_p11 = scmp.lt.u32.totalorder %s2108_s6, %s2204_s3 }
 0x193   : > { %p1646_p1 = scmp.lt.u32.totalorder %s1644_s18, %s1640_s26  ;;  %p1648_p12 = scmp.lt.u32.totalorder %s1640_s26, %s2108_s6 }
 0x194   : > { %p1642_p4 = pnand %p1641_p0, %p2232_p13 }
 0x195   : > { %p1647_p2 = por %p1646_p1, %p1645_p11 }
 0x196   : > { %p1643_p10 = pneg %p1642_p4 }
 0x197   : > { %p1649_p3 = por %p1648_p12, %p1647_p2 }
 0x199   : > { %p1650_p7 = pnand %p1649_p3, %p1643_p10 }
 0x19b   : > { %1653 = shalt.err (!%p1650_p7)
}
 0x19c   : > { %s1772_s9 = smov 64   ;;  %s1773_s10 = smov 4  }
 0x19d   : > { %1420 = dma.vmem_to_hbm [thread:$0]  (%p2232_p13), %s2099_s24, 1024, %s2108_s6, %s942_s27, %s1772_s9, %s1772_s9, %s1773_s10  }
 0x19e   : > { %s947_s30 = scalar_lea.sflag [#allocation10], %s2014_s23  ;;  %s1654_s1 = scalar_lea.vmem %s2101_s15, 1024 }
 0x19f   : > { %p1655_p6 = scmp.ne.s32.totalorder %s2101_s15, %s1654_s1  ;;  %s1774_s5 = smov [#allocation9]  }
 0x1a0   : > { %s1658_s25 = sshll.u32 %s1774_s5, 4  ;;  %s1659_s25 = int_to_ptr.vmem [resolvable:$false] %s1658_s25 }
 0x1a1   : > { %p1656_p8 = pnand %p1655_p6, %p2232_p13  ;;  %s1660_s26 = scalar_lea.vmem %s1659_s25, 2048 }
 0x1a2   : > { %p1661_p5 = scmp.lt.s32.totalorder %s2101_s15, %s1659_s25  ;;  %p1662_p0 = scmp.lt.s32.totalorder %s1660_s26, %s1654_s1 }
 0x1a3   : > { %p1657_p9 = pneg %p1656_p8 }
 0x1a4   : > { %p1663_p4 = por %p1662_p0, %p1661_p5 }
 0x1a6   : > { %p1664_p10 = pnand %p1663_p4, %p1657_p9 }
 0x1a8   : > { %1667 = shalt.err (!%p1664_p10)
}
 0x1a9   : > { %s1668_s24 = scalar_lea.hbm %s2115_s11, 1024  ;;  %s1672_s28 = scalar_lea.hbm %s2205_s4, 4096 }
 0x1aa   : > { %p1669_p11 = scmp.ne.s32.totalorder %s2115_s11, %s1668_s24  ;;  %p1673_p12 = scmp.lt.u32.totalorder %s2115_s11, %s2205_s4 }
 0x1ab   : > { %p1674_p3 = scmp.lt.u32.totalorder %s1672_s28, %s1668_s24  ;;  %p1676_p6 = scmp.lt.u32.totalorder %s1668_s24, %s2115_s11 }
 0x1ac   : > { %p1670_p1 = pnand %p1669_p11, %p2232_p13 }
 0x1ad   : > { %p1675_p7 = por %p1674_p3, %p1673_p12 }
 0x1ae   : > { %p1671_p2 = pneg %p1670_p1 }
 0x1af   : > { %p1677_p8 = por %p1676_p6, %p1675_p7 }
 0x1b1   : > { %p1678_p9 = pnand %p1677_p8, %p1671_p2 }
 0x1b3   : > { %1681 = shalt.err (!%p1678_p9)
}
 0x1b4   : > { %1421 = dma.vmem_to_hbm [thread:$0]  (%p2232_p13), %s2101_s15, 1024, %s2115_s11, %s947_s30, %s1772_s9, %s1772_s9, %s1773_s10  }
 0x1b5 PF: > { %s2233_s19 = sld [smem:[#allocation15_spill]]  ;;  %s2234_s8 = sld [smem:[#allocation16_spill]] }
 0x1b6   : > { %p1447_p5 = scmp.ge.s32.totalorder %s1760_s22, 2 }
 0x1bb   : > { %s995_s1 = sand.u32 1, %s2233_s19   ;;  %p2235_p0 = scmp.ne.s32.totalorder %s2234_s8, 0 }
 0x1bc   : > { %s996_s5 = scalar_lea.sflag [#allocation4], %s995_s1 }
 0x1bd   : > { %p1436_p4 = pnand %p1447_p5, %p2235_p0 }
 0x1bf   : > { %1723 = dma.done.wait (!%p1436_p4), %s996_s5, 1024  }
 0x1c0   : > { %1725 = vsyncadd (!%p1436_p4), %s996_s5, 4294966272  ;;  %s1005_s29 = scalar_lea.sflag [#allocation10], %s995_s1 }
 0x1c1   : > { %1727 = dma.done.wait (!%p1436_p4), %s1005_s29, 1024  }
 0x1c2   : > { %1729 = vsyncadd (!%p1436_p4), %s1005_s29, 4294966272  ;;  %s25_s22 = sadd.s32 1, %s1760_s22   ;;  %s2236_s15 = smov %s1736_s16 }
 0x1c3   : > { %p22_p10 = scmp.ge.s32.totalorder %s25_s22, 6   ;;  %s2237_s16 = smov %s1740_s17 }
 0x1c4   : > { %s2238_s17 = smov %s2009_s12  ;;  %s2239_s18 = smov %s1752_s20 }
 0x1c5   : > { %s2240_s19 = smov %s1756_s21  ;;  %s2241_s20 = smov %s2244_s13 }
 0x1c6   : > { %s2242_s21 = smov %s2248_s14  ;;  %24 = sbr.rel (!%p22_p10) target bundleno = 12 (0xc), region = 102 }
 0x1cd   :  { %1010 = vsyncpa [#allocation3], 1 }
 0x1ce   :  { %1012 = vsyncpa [#allocation3 + $0x1], 1 }
 0x1cf   :  { %1013 = vsyncpa [#allocation6], 1 }
 0x1d0   :  { %1014 = vsyncpa [#allocation4], 1 }
 0x1d1   :  { %1016 = vsyncpa [#allocation4 + $0x1], 1 }
 0x1d2   :  { %1017 = vsyncpa [#allocation10], 1 }
 0x1d3   :  { %1019 = vsyncpa [#allocation10 + $0x1], 1 }

</bundles_post_ra>
